<compile_context>
chip_gen: v7x
topology: tpu7x:2x2x1
jax: 0.10.0
libtpu: 0.0.40
codegen_flags: <defaults>
</compile_context>

<pallas_src>
import functools

import jax
import jax.numpy as jnp
from jax.experimental import pallas as pl
from jax.experimental.pallas import tpu as pltpu


# --------------------------------------------------------------------------
# Generation-aware helpers
# --------------------------------------------------------------------------
def _vmem_capacity_bytes():
    try:
        return int(pltpu.get_tpu_info().vmem_capacity_bytes)
    except Exception:
        return 64 << 20            # conservative (v7x-sized) fallback


def _tanh_dtype(matmul_dtype):
    """bf16 tanh only on bf16-EUP chips (v6e/v7x) and only on the fast path."""
    if jnp.dtype(matmul_dtype) != jnp.dtype(jnp.bfloat16):
        return jnp.float32
    try:
        kind = jax.devices()[0].device_kind.lower()
    except Exception:
        return jnp.float32
    if "v6" in kind or "v7" in kind:
        return jnp.bfloat16
    return jnp.float32             # v5e / v4 / unknown: no bf16 EUP/VPU


def _vmem_estimate(h, t_blk, mm_bytes, act_bytes):
    f32 = 4
    tile = h * t_blk
    return (2 * tile * mm_bytes            # double-buffered v^T tile
            + 2 * t_blk                    # int8 mask tile
            + 2 * 2 * h * h * mm_bytes     # W1, W2 (resident)
            + 2 * h * (mm_bytes + 2 * f32) # q tile, vw row, out tile
            + 2 * tile * f32               # w2v / pre-activation f32 temps
            + tile * act_bytes             # hidden
            + tile * f32                   # promoted v^T in the acc update
            + 4 * h * f32)                 # scratch accumulators


# --------------------------------------------------------------------------
# Kernel
# --------------------------------------------------------------------------
def _mlp_attention_kernel(q_ref, vt_ref, mask_ref, w1_ref, w2_ref, vw_ref,
                          out_ref, w1q_sc, m_sc, l_sc, acc_sc,
                          *, t_valid, t_blk, has_pad, tanh_dtype):
    j = pl.program_id(1)

    @pl.when(j == 0)
    def _init():
        # W1(q) for this batch row, cached once in (h, 1) column layout so it
        # broadcasts over the lane (time) axis below; re-used for every step.
        w1q_sc[...] = jnp.dot(w1_ref[...], q_ref[0],
                              preferred_element_type=jnp.float32)
        m_sc[...] = jnp.full(m_sc.shape, -jnp.inf, dtype=jnp.float32)
        l_sc[...] = jnp.zeros(l_sc.shape, dtype=jnp.float32)
        acc_sc[...] = jnp.zeros(acc_sc.shape, dtype=jnp.float32)

    vt = vt_ref[0]                                          # (h, t_blk) mm dtype

    # W2(v): (h, h) @ (h, t_blk) MXU matmul, time on lanes, f32 accumulation.
    w2v = jnp.dot(w2_ref[...], vt, preferred_element_type=jnp.float32)

    # tanh(W1 q + W2 v): lane-dense; bf16 on bf16-EUP chips (fast path only).
    hidden = jnp.tanh((w1q_sc[...] + w2v).astype(tanh_dtype))  # (h, t_blk)

    # V projection (output width 1): (1, h) @ (h, t_blk) on the MXU
    # (frees VPU/XLU slots to hide under the EUP-bound tanh).
    score = jnp.dot(vw_ref[...].astype(hidden.dtype), hidden,
                    preferred_element_type=jnp.float32)         # (1, t_blk)

    # masked_fill(mask == 0, -1e9); mask streamed as int8 (1 = valid).
    valid = mask_ref[0].astype(jnp.int32) != 0
    score = jnp.where(valid, score, jnp.float32(-1e9))

    # Online softmax over the streamed time axis.
    m_prev = m_sc[...]                                          # (1, 1)
    m_new = jnp.maximum(m_prev, jnp.max(score, axis=-1, keepdims=True))
    alpha = jnp.exp(m_prev - m_new)
    p = jnp.exp(score - m_new)                                  # (1, t_blk)
    if has_pad:
        # Exactly zero the tail padding so the degenerate fully-masked-row
        # case keeps the reference denominator (uniform over the true t).
        pos = j * t_blk + jax.lax.broadcasted_iota(jnp.int32, (1, t_blk), 1)
        p = jnp.where(pos < t_valid, p, jnp.float32(0.0))

    l_sc[...] = alpha * l_sc[...] + jnp.sum(p, axis=-1, keepdims=True)
    # Weighted-V accumulation: f32 VPU multiply + lane reduce on the
    # lane-dense tile; cheap next to the tanh and keeps f32 accumulation.
    acc_sc[...] = alpha * acc_sc[...] + jnp.sum(vt * p, axis=-1, keepdims=True)
    m_sc[...] = m_new

    @pl.when(j == pl.num_programs(1) - 1)
    def _finalize():
        out = acc_sc[...] / l_sc[...]                           # exact divide
        out_ref[...] = out[None, :, :].astype(out_ref.dtype)    # (1, h, 1)


# --------------------------------------------------------------------------
# Wrapper
# --------------------------------------------------------------------------
def mlp_attention(q, v, mask, w1, w2, vw, *, t_blk=None,
                  matmul_dtype=jnp.bfloat16):
    """q: (b, h), v: (b, t, h), mask: (b, t) nonzero=valid (or None),
    w1/w2: (h, h) PyTorch Linear weights (out, in), vw: (1, h)."""
    b, t, h = v.shape
    assert q.shape == (b, h) and w1.shape == (h, h) and w2.shape == (h, h)
    assert h % 8 == 0, "hidden_dim must be a multiple of 8 (sublane tiling)"

    mm_dtype = jnp.dtype(matmul_dtype)
    mm_bytes = mm_dtype.itemsize
    tanh_dtype = _tanh_dtype(mm_dtype)
    act_bytes = jnp.dtype(tanh_dtype).itemsize
    vmem_cap = _vmem_capacity_bytes()
    budget = (vmem_cap * 3) // 4

    # Time-axis tiling: t_blk sits on the lane axis, so it must be a multiple
    # of 128 (or the whole, possibly-unaligned, sequence in a single block).
    if t_blk is None:
        t_blk = 512 if vmem_cap >= (96 << 20) else 256
        while t_blk > 128 and 2 * _vmem_estimate(h, t_blk, mm_bytes,
                                                 act_bytes) > budget:
            t_blk //= 2
    if t_blk >= t:
        t_blk, t_pad = t, t
    else:
        assert t_blk % 128 == 0, "t_blk must be a multiple of 128 when t > t_blk"
        t_pad = pl.cdiv(t, t_blk) * t_blk
    nb = t_pad // t_blk
    has_pad = t_pad > t

    est = _vmem_estimate(h, t_blk, mm_bytes, act_bytes)
    vmem_limit = int(min(budget, max(32 << 20, 4 * est)))

    # Layout plumbing (single fused XLA pass over v; hoistable by the caller
    # across decode steps since encoder states are fixed): (b, t, h) ->
    # (b, h, t) puts the streamed time axis on lanes, cast to streaming dtype.
    vt = jnp.swapaxes(v, 1, 2).astype(mm_dtype)                 # (b, h, t)
    q3 = q[:, :, None].astype(mm_dtype)                         # (b, h, 1)
    if mask is None:
        mask_i8 = jnp.ones((b, 1, t), dtype=jnp.int8)
    else:
        mask_i8 = (mask != 0).astype(jnp.int8).reshape(b, 1, t)
    if has_pad:
        vt = jnp.pad(vt, ((0, 0), (0, 0), (0, t_pad - t)))
        mask_i8 = jnp.pad(mask_i8, ((0, 0), (0, 0), (0, t_pad - t)))
    w1c = w1.astype(mm_dtype)                                   # (out, in)
    w2c = w2.astype(mm_dtype)                                   # (out, in)
    vw2 = vw.reshape(1, h).astype(jnp.float32)

    kernel = functools.partial(_mlp_attention_kernel, t_valid=t, t_blk=t_blk,
                               has_pad=has_pad, tanh_dtype=tanh_dtype)

    grid_spec = pltpu.PrefetchScalarGridSpec(
        num_scalar_prefetch=0,
        grid=(b, nb),                          # (parallel batch, reduction t)
        in_specs=[
            pl.BlockSpec((1, h, 1), lambda i, j: (i, 0, 0)),        # q col
            pl.BlockSpec((1, h, t_blk), lambda i, j: (i, 0, j)),    # v^T tile
            pl.BlockSpec((1, 1, t_blk), lambda i, j: (i, 0, j)),    # mask int8
            pl.BlockSpec((h, h), lambda i, j: (0, 0)),              # W1
            pl.BlockSpec((h, h), lambda i, j: (0, 0)),              # W2
            pl.BlockSpec((1, h), lambda i, j: (0, 0)),              # V row
        ],
        out_specs=pl.BlockSpec((1, h, 1), lambda i, j: (i, 0, 0)),
        scratch_shapes=[
            pltpu.VMEM((h, 1), jnp.float32),   # cached W1(q), column layout
            pltpu.VMEM((1, 1), jnp.float32),   # running max
            pltpu.VMEM((1, 1), jnp.float32),   # running sum
            pltpu.VMEM((h, 1), jnp.float32),   # weighted-V accumulator
        ],
    )
    out3 = pl.pallas_call(
        kernel,
        out_shape=jax.ShapeDtypeStruct((b, h, 1), q.dtype),
        grid_spec=grid_spec,
        compiler_params=pltpu.CompilerParams(
            dimension_semantics=("parallel", "arbitrary"),
            vmem_limit_bytes=vmem_limit),
    )(q3, vt, mask_i8, w1c, w2c, vw2)
    return out3.reshape(b, h)


# --------------------------------------------------------------------------
# Pure-JAX reference and self-test
# --------------------------------------------------------------------------
def _reference(q, v, mask, w1, w2, vw):
    qs = q[:, None, :]
    score = jnp.tanh(qs @ w1.T + v @ w2.T) @ vw.T              # (b, t, 1)
    score = jnp.where(mask[:, :, None] == 0, -1e9, score)
    ws = jax.nn.softmax(score, axis=1)
    return jnp.sum(ws * v, axis=1)


if __name__ == "__main__":
    key = jax.random.PRNGKey(0)
    b, h = 3, 32
    t = 200                       # not a multiple of 128: exercises padding

    k_q, k_v, k_w1, k_w2, k_vw = jax.random.split(key, 5)
    q = jax.random.normal(k_q, (b, h), dtype=jnp.float32)
    v = jax.random.normal(k_v, (b, t, h), dtype=jnp.float32)
    # PyTorch Linear weight shape: (out_features, in_features)
    w1 = jax.random.normal(k_w1, (h, h), dtype=jnp.float32) * 0.1
    w2 = jax.random.normal(k_w2, (h, h), dtype=jnp.float32) * 0.1
    vw = jax.random.normal(k_vw, (1, h), dtype=jnp.float32) * 0.1
    # encoder mask: 1 = valid, 0 = padded
    mask = jnp.ones((b, t), dtype=jnp.float32)
    mask = mask.at[1, t // 2:].set(0.0)       # half-masked row
    mask = mask.at[2, :].set(0.0)             # fully-masked row (degenerate)

    ref = _reference(q, v, mask, w1, w2, vw)

    # f32 path, streamed in 128-wide lane-dense time blocks (t padded to 256).
    out_f32 = jax.block_until_ready(
        mlp_attention(q, v, mask, w1, w2, vw, t_blk=128,
                      matmul_dtype=jnp.float32))
    assert out_f32.shape == (b, h)
    assert jnp.allclose(out_f32, ref, atol=2e-3, rtol=2e-3), "f32 mismatch"

    # Default fast path: bf16 streamed v / bf16 MXU operands (+ bf16 tanh on
    # bf16-EUP chips), generation-derived t_blk.
    out_bf16 = jax.block_until_ready(mlp_attention(q, v, mask, w1, w2, vw))
    assert out_bf16.shape == (b, h)
    assert jnp.allclose(out_bf16, ref, atol=6e-2, rtol=6e-2), "bf16 mismatch"

    # mask=None path on an aligned sequence length.
    t2 = 256
    v2 = jax.random.normal(k_v, (b, t2, h), dtype=jnp.float32)
    ref2 = _reference(q, v2, jnp.ones((b, t2)), w1, w2, vw)
    out2 = jax.block_until_ready(
        mlp_attention(q, v2, None, w1, w2, vw, t_blk=128,
                      matmul_dtype=jnp.float32))
    assert jnp.allclose(out2, ref2, atol=2e-3, rtol=2e-3), "no-mask mismatch"

    print("KERNEL_OK")
</pallas_src>

<mosaic_0001>
module attributes {stable_mosaic.version = 11 : i64} {
  func.func @_mlp_attention_kernel(%arg0: i32, %arg1: i32, %arg2: memref<1x32x1xf32, #tpu.memory_space<vmem>>, %arg3: memref<1x32x128xf32, #tpu.memory_space<vmem>>, %arg4: memref<1x1x128xi8, #tpu.memory_space<vmem>>, %arg5: memref<32x32xf32, #tpu.memory_space<vmem>>, %arg6: memref<32x32xf32, #tpu.memory_space<vmem>>, %arg7: memref<1x32xf32, #tpu.memory_space<vmem>>, %arg8: memref<1x32x1xf32, #tpu.memory_space<vmem>>, %arg9: memref<32x1xf32, #tpu.memory_space<vmem>>, %arg10: memref<1x1xf32, #tpu.memory_space<vmem>>, %arg11: memref<1x1xf32, #tpu.memory_space<vmem>>, %arg12: memref<32x1xf32, #tpu.memory_space<vmem>>) attributes {dimension_semantics = [#tpu.dimension_semantics<parallel>, #tpu.dimension_semantics<arbitrary>], iteration_bounds = array<i64: 3, 2>, scalar_prefetch = 0 : i64, scratch_operands = 4 : i64, tpu.core_type = #tpu.core_type<tc>, window_params = [{transform_indices = @transform_0, window_bounds = array<i64: 1, 32, 1>}, {transform_indices = @transform_1, window_bounds = array<i64: 1, 32, 128>}, {transform_indices = @transform_2, window_bounds = array<i64: 1, 1, 128>}, {pipeline_mode = #tpu.pipeline_mode<synchronous>, transform_indices = @transform_3, window_bounds = array<i64: 32, 32>}, {pipeline_mode = #tpu.pipeline_mode<synchronous>, transform_indices = @transform_4, window_bounds = array<i64: 32, 32>}, {pipeline_mode = #tpu.pipeline_mode<synchronous>, transform_indices = @transform_5, window_bounds = array<i64: 1, 32>}, {transform_indices = @transform_6, window_bounds = array<i64: 1, 32, 1>}]} {
    %c0_i32 = arith.constant 0 : i32
    %0 = arith.cmpi eq, %arg1, %c0_i32 : i32
    %1 = arith.extui %0 : i1 to i32
    %c0_i32_0 = arith.constant 0 : i32
    %2 = arith.cmpi ne, %1, %c0_i32_0 : i32
    scf.if %2 {
      %c0_32 = arith.constant 0 : index
      %c0_33 = arith.constant 0 : index
      %56 = vector.load %arg5[%c0_32, %c0_33] : memref<32x32xf32, #tpu.memory_space<vmem>>, vector<32x32xf32>
      %c0_34 = arith.constant 0 : index
      %c0_35 = arith.constant 0 : index
      %c0_36 = arith.constant 0 : index
      %57 = vector.load %arg2[%c0_34, %c0_35, %c0_36] : memref<1x32x1xf32, #tpu.memory_space<vmem>>, vector<1x32x1xf32>
      %58 = vector.shape_cast %57 : vector<1x32x1xf32> to vector<32x1xf32>
      %cst_37 = arith.constant dense<0.000000e+00> : vector<32x1xf32>
      %59 = tpu.matmul %56, %58, %cst_37 {dimension_numbers = #tpu.dot_dimension_numbers<[1], [0], [0], [1], [0, 0, 1, 1], [], []>} : vector<32x32xf32>, vector<32x1xf32>, vector<32x1xf32> -> vector<32x1xf32>
      %c0_38 = arith.constant 0 : index
      %c0_39 = arith.constant 0 : index
      %60 = vector.load %arg9[%c0_38, %c0_39] : memref<32x1xf32, #tpu.memory_space<vmem>>, vector<32x1xf32>
      tpu.vector_store %arg9[%c0_38, %c0_39], %59 {strides = array<i32>} : memref<32x1xf32, #tpu.memory_space<vmem>>, vector<32x1xf32>,
      %cst_40 = arith.constant 0xFF800000 : f32
      %61 = vector.broadcast %cst_40 : f32 to vector<1x1xf32>
      %c0_41 = arith.constant 0 : index
      %c0_42 = arith.constant 0 : index
      %62 = vector.load %arg10[%c0_41, %c0_42] : memref<1x1xf32, #tpu.memory_space<vmem>>, vector<1x1xf32>
      tpu.vector_store %arg10[%c0_41, %c0_42], %61 {strides = array<i32>} : memref<1x1xf32, #tpu.memory_space<vmem>>, vector<1x1xf32>,
      %cst_43 = arith.constant 0.000000e+00 : f32
      %63 = vector.broadcast %cst_43 : f32 to vector<1x1xf32>
      %c0_44 = arith.constant 0 : index
      %c0_45 = arith.constant 0 : index
      %64 = vector.load %arg11[%c0_44, %c0_45] : memref<1x1xf32, #tpu.memory_space<vmem>>, vector<1x1xf32>
      tpu.vector_store %arg11[%c0_44, %c0_45], %63 {strides = array<i32>} : memref<1x1xf32, #tpu.memory_space<vmem>>, vector<1x1xf32>,
      %cst_46 = arith.constant 0.000000e+00 : f32
      %65 = vector.broadcast %cst_46 : f32 to vector<32x1xf32>
      %c0_47 = arith.constant 0 : index
      %c0_48 = arith.constant 0 : index
      %66 = vector.load %arg12[%c0_47, %c0_48] : memref<32x1xf32, #tpu.memory_space<vmem>>, vector<32x1xf32>
      tpu.vector_store %arg12[%c0_47, %c0_48], %65 {strides = array<i32>} : memref<32x1xf32, #tpu.memory_space<vmem>>, vector<32x1xf32>,
    } else {
    }
    %c0 = arith.constant 0 : index
    %c0_1 = arith.constant 0 : index
    %c0_2 = arith.constant 0 : index
    %3 = vector.load %arg3[%c0, %c0_1, %c0_2] : memref<1x32x128xf32, #tpu.memory_space<vmem>>, vector<1x32x128xf32>
    %4 = vector.shape_cast %3 : vector<1x32x128xf32> to vector<32x128xf32>
    %c0_3 = arith.constant 0 : index
    %c0_4 = arith.constant 0 : index
    %5 = vector.load %arg6[%c0_3, %c0_4] : memref<32x32xf32, #tpu.memory_space<vmem>>, vector<32x32xf32>
    %cst = arith.constant dense<0.000000e+00> : vector<32x128xf32>
    %6 = tpu.matmul %5, %4, %cst {dimension_numbers = #tpu.dot_dimension_numbers<[1], [0], [0], [1], [0, 0, 1, 1], [], []>} : vector<32x32xf32>, vector<32x128xf32>, vector<32x128xf32> -> vector<32x128xf32>
    %c0_5 = arith.constant 0 : index
    %c0_6 = arith.constant 0 : index
    %7 = vector.load %arg9[%c0_5, %c0_6] : memref<32x1xf32, #tpu.memory_space<vmem>>, vector<32x1xf32>
    %8 = vector.broadcast %7 : vector<32x1xf32> to vector<32x128xf32>
    %9 = arith.addf %8, %6 : vector<32x128xf32>
    %10 = math.tanh %9 : vector<32x128xf32>
    %c0_7 = arith.constant 0 : index
    %c0_8 = arith.constant 0 : index
    %11 = vector.load %arg7[%c0_7, %c0_8] : memref<1x32xf32, #tpu.memory_space<vmem>>, vector<1x32xf32>
    %cst_9 = arith.constant dense<0.000000e+00> : vector<1x128xf32>
    %12 = tpu.matmul %11, %10, %cst_9 {dimension_numbers = #tpu.dot_dimension_numbers<[1], [0], [0], [1], [0, 0, 1, 1], [], []>} : vector<1x32xf32>, vector<32x128xf32>, vector<1x128xf32> -> vector<1x128xf32>
    %c0_10 = arith.constant 0 : index
    %c0_11 = arith.constant 0 : index
    %c0_12 = arith.constant 0 : index
    %13 = vector.load %arg4[%c0_10, %c0_11, %c0_12] : memref<1x1x128xi8, #tpu.memory_space<vmem>>, vector<1x1x128xi8>
    %14 = vector.shape_cast %13 : vector<1x1x128xi8> to vector<1x128xi8>
    %15 = arith.extsi %14 : vector<1x128xi8> to vector<1x128xi32>
    %c0_i32_13 = arith.constant 0 : i32
    %16 = vector.broadcast %c0_i32_13 : i32 to vector<1x128xi32>
    %17 = arith.cmpi ne, %15, %16 : vector<1x128xi32>
    %cst_14 = arith.constant -1.000000e+09 : f32
    %18 = vector.broadcast %cst_14 : f32 to vector<1x128xf32>
    %19 = arith.select %17, %12, %18 : vector<1x128xi1>, vector<1x128xf32>
    %c0_15 = arith.constant 0 : index
    %c0_16 = arith.constant 0 : index
    %20 = vector.load %arg10[%c0_15, %c0_16] : memref<1x1xf32, #tpu.memory_space<vmem>>, vector<1x1xf32>
    %cst_17 = arith.constant dense<0xFF800000> : vector<1xf32>
    %21 = vector.multi_reduction <maximumf>, %19, %cst_17 [1] : vector<1x128xf32> to vector<1xf32>
    %22 = vector.shape_cast %21 : vector<1xf32> to vector<1x1xf32>
    %23 = arith.maximumf %20, %22 : vector<1x1xf32>
    %24 = arith.subf %20, %23 : vector<1x1xf32>
    %25 = math.exp %24 : vector<1x1xf32>
    %26 = vector.broadcast %23 : vector<1x1xf32> to vector<1x128xf32>
    %27 = arith.subf %19, %26 : vector<1x128xf32>
    %28 = math.exp %27 : vector<1x128xf32>
    %c128_i32 = arith.constant 128 : i32
    %29 = arith.muli %arg1, %c128_i32 : i32
    %30 = tpu.iota {dimensions = array<i32: 1>} : vector<1x128xi32>
    %31 = vector.broadcast %29 : i32 to vector<1x128xi32>
    %32 = arith.addi %31, %30 : vector<1x128xi32>
    %c200_i32 = arith.constant 200 : i32
    %33 = vector.broadcast %c200_i32 : i32 to vector<1x128xi32>
    %34 = arith.cmpi slt, %32, %33 : vector<1x128xi32>
    %cst_18 = arith.constant 0.000000e+00 : f32
    %35 = vector.broadcast %cst_18 : f32 to vector<1x128xf32>
    %36 = arith.select %34, %28, %35 : vector<1x128xi1>, vector<1x128xf32>
    %c0_19 = arith.constant 0 : index
    %c0_20 = arith.constant 0 : index
    %37 = vector.load %arg11[%c0_19, %c0_20] : memref<1x1xf32, #tpu.memory_space<vmem>>, vector<1x1xf32>
    %38 = arith.mulf %25, %37 : vector<1x1xf32>
    %cst_21 = arith.constant dense<0.000000e+00> : vector<1xf32>
    %39 = vector.multi_reduction <add>, %36, %cst_21 [1] : vector<1x128xf32> to vector<1xf32>
    %40 = vector.shape_cast %39 : vector<1xf32> to vector<1x1xf32>
    %41 = arith.addf %38, %40 : vector<1x1xf32>
    %c0_22 = arith.constant 0 : index
    %c0_23 = arith.constant 0 : index
    %42 = vector.load %arg11[%c0_22, %c0_23] : memref<1x1xf32, #tpu.memory_space<vmem>>, vector<1x1xf32>
    tpu.vector_store %arg11[%c0_22, %c0_23], %41 {strides = array<i32>} : memref<1x1xf32, #tpu.memory_space<vmem>>, vector<1x1xf32>,
    %c0_24 = arith.constant 0 : index
    %c0_25 = arith.constant 0 : index
    %43 = vector.load %arg12[%c0_24, %c0_25] : memref<32x1xf32, #tpu.memory_space<vmem>>, vector<32x1xf32>
    %44 = vector.broadcast %25 : vector<1x1xf32> to vector<32x1xf32>
    %45 = arith.mulf %44, %43 : vector<32x1xf32>
    %46 = vector.broadcast %36 : vector<1x128xf32> to vector<32x128xf32>
    %47 = arith.mulf %4, %46 : vector<32x128xf32>
    %cst_26 = arith.constant dense<0.000000e+00> : vector<32xf32>
    %48 = vector.multi_reduction <add>, %47, %cst_26 [1] : vector<32x128xf32> to vector<32xf32>
    %49 = vector.shape_cast %48 : vector<32xf32> to vector<32x1xf32>
    %50 = arith.addf %45, %49 : vector<32x1xf32>
    %c0_27 = arith.constant 0 : index
    %c0_28 = arith.constant 0 : index
    %51 = vector.load %arg12[%c0_27, %c0_28] : memref<32x1xf32, #tpu.memory_space<vmem>>, vector<32x1xf32>
    tpu.vector_store %arg12[%c0_27, %c0_28], %50 {strides = array<i32>} : memref<32x1xf32, #tpu.memory_space<vmem>>, vector<32x1xf32>,
    %c0_29 = arith.constant 0 : index
    %c0_30 = arith.constant 0 : index
    %52 = vector.load %arg10[%c0_29, %c0_30] : memref<1x1xf32, #tpu.memory_space<vmem>>, vector<1x1xf32>
    tpu.vector_store %arg10[%c0_29, %c0_30], %23 {strides = array<i32>} : memref<1x1xf32, #tpu.memory_space<vmem>>, vector<1x1xf32>,
    %c1_i32 = arith.constant 1 : i32
    %53 = arith.cmpi eq, %arg1, %c1_i32 : i32
    %54 = arith.extui %53 : i1 to i32
    %c0_i32_31 = arith.constant 0 : i32
    %55 = arith.cmpi ne, %54, %c0_i32_31 : i32
    scf.if %55 {
      %c0_32 = arith.constant 0 : index
      %c0_33 = arith.constant 0 : index
      %56 = vector.load %arg12[%c0_32, %c0_33] : memref<32x1xf32, #tpu.memory_space<vmem>>, vector<32x1xf32>
      %c0_34 = arith.constant 0 : index
      %c0_35 = arith.constant 0 : index
      %57 = vector.load %arg11[%c0_34, %c0_35] : memref<1x1xf32, #tpu.memory_space<vmem>>, vector<1x1xf32>
      %58 = vector.broadcast %57 : vector<1x1xf32> to vector<32x1xf32>
      %59 = arith.divf %56, %58 : vector<32x1xf32>
      %60 = vector.shape_cast %59 : vector<32x1xf32> to vector<1x32x1xf32>
      %c0_36 = arith.constant 0 : index
      %c0_37 = arith.constant 0 : index
      %c0_38 = arith.constant 0 : index
      %61 = vector.load %arg8[%c0_36, %c0_37, %c0_38] : memref<1x32x1xf32, #tpu.memory_space<vmem>>, vector<1x32x1xf32>
      tpu.vector_store %arg8[%c0_36, %c0_37, %c0_38], %60 {strides = array<i32>} : memref<1x32x1xf32, #tpu.memory_space<vmem>>, vector<1x32x1xf32>,
    } else {
    }
    return
  }
  func.func @transform_0(%arg0: i32, %arg1: i32) -> (i32, i32, i32) {
    %c0_i32 = arith.constant 0 : i32
    %c0_i32_0 = arith.constant 0 : i32
    %c0_i32_1 = arith.constant 0 : i32
    return %arg0, %c0_i32, %c0_i32_0 : i32, i32, i32
  }
  func.func @transform_1(%arg0: i32, %arg1: i32) -> (i32, i32, i32) {
    %c0_i32 = arith.constant 0 : i32
    %c0_i32_0 = arith.constant 0 : i32
    return %arg0, %c0_i32, %arg1 : i32, i32, i32
  }
  func.func @transform_2(%arg0: i32, %arg1: i32) -> (i32, i32, i32) {
    %c0_i32 = arith.constant 0 : i32
    %c0_i32_0 = arith.constant 0 : i32
    return %arg0, %c0_i32, %arg1 : i32, i32, i32
  }
  func.func @transform_3(%arg0: i32, %arg1: i32) -> (i32, i32) {
    %c0_i32 = arith.constant 0 : i32
    %c0_i32_0 = arith.constant 0 : i32
    %c0_i32_1 = arith.constant 0 : i32
    return %c0_i32, %c0_i32_0 : i32, i32
  }
  func.func @transform_4(%arg0: i32, %arg1: i32) -> (i32, i32) {
    %c0_i32 = arith.constant 0 : i32
    %c0_i32_0 = arith.constant 0 : i32
    %c0_i32_1 = arith.constant 0 : i32
    return %c0_i32, %c0_i32_0 : i32, i32
  }
  func.func @transform_5(%arg0: i32, %arg1: i32) -> (i32, i32) {
    %c0_i32 = arith.constant 0 : i32
    %c0_i32_0 = arith.constant 0 : i32
    %c0_i32_1 = arith.constant 0 : i32
    return %c0_i32, %c0_i32_0 : i32, i32
  }
  func.func @transform_6(%arg0: i32, %arg1: i32) -> (i32, i32, i32) {
    %c0_i32 = arith.constant 0 : i32
    %c0_i32_0 = arith.constant 0 : i32
    %c0_i32_1 = arith.constant 0 : i32
    return %arg0, %c0_i32, %c0_i32_0 : i32, i32, i32
  }
}

</mosaic_0001>

<bundles_post_ra>
// kernel: tpu_custom_call.1
= control target key start
LH: loop header
LB: loop body
LE: loop exit
PB: predicated region body
PF: predicated region fallthrough
CT: control target
= control target key end

     0   :  { %s1490_s0 = inlined_call_operand.vmem [shape: f32[3,32,1], index: 0, kind: input, shape index: {}]   ;;  %s1491_s1 = inlined_call_operand.hbm [shape: f32[3,32,256], index: 1, kind: input, shape index: {}]   ;;  %s1492_s2 = inlined_call_operand.vmem [shape: s8[3,1,256], index: 2, kind: input, shape index: {}]   ;;  %s1493_s3 = inlined_call_operand.vmem [shape: f32[32,32], index: 3, kind: input, shape index: {}]   ;;  %s1494_s4 = inlined_call_operand.vmem [shape: f32[32,32], index: 4, kind: input, shape index: {}]   ;;  %s1495_s5 = inlined_call_operand.vmem [shape: f32[1,32], index: 5, kind: input, shape index: {}]   ;;  %s1496_s6 = inlined_call_operand.vmem [shape: f32[3,32,1], index: 6, kind: output, shape index: {}]  }
   0x1   :  { %1498 = sst [smem:[#allocation10_spill]] %s1495_s5 }
   0x2   :  { %11 = vsyncpa [#allocation7], 0 }
   0x3   :  { %13 = vsyncpa [#allocation7 + $0x1], 0  ;;  %s1236_s21 = smov 0   ;;  %s1238_s22 = smov 0  }
   0x4   :  { %s1240_s23 = smov 0   ;;  %s1242_s24 = smov 0  }
   0x5   :  { %s1244_s25 = smov 0   ;;  %s1246_s26 = smov 0  }
   0x6   :  { %s1248_s27 = smov 0   ;;  %s1250_s28 = smov 0  }
   0x7 LB: > { %s880_s29 = sadd.s32 4294967295, %s1189_s28   ;;  %s28_s30 = sadd.s32 1, %s1181_s26  ;;  %s1189_s28 = sphi %s1250_s28, %s19_s28   ;;  %s1185_s27 = sphi %s1248_s27, %s1512_s27   ;;  %s1181_s26 = sphi %s1246_s26, %s1511_s26   ;;  %s1177_s25 = sphi %s1244_s25, %s1510_s25   ;;  %s1173_s24 = sphi %s1242_s24, %s1509_s24   ;;  %s1169_s23 = sphi %s1240_s23, %s1508_s23   ;;  %s1165_s22 = sphi %s1238_s22, %s1507_s22   ;;  %s1161_s21 = sphi %s1236_s21, %s1506_s21  }
   0x8   : > { %p29_p0 = scmp.ge.s32.totalorder %s28_s30, 2  ;;  %s31_s7 = sadd.s32 1, %s1185_s27 }
   0x9   : > { %s66_s8 = sadd.s32 1, %s1169_s23  ;;  %p73_p1 = scmp.ne.s32.totalorder %s1169_s23, %s1165_s22 }
   0xa   : > { %s1514_s30 = smov (%p29_p0, %s28_s30), 0  ;;  %s1516_s7 = smov (!%p29_p0, %s31_s7), %s1185_s27 }
   0xb   : > { %1499 = sst [smem:[#allocation9_spill]] %s1514_s30  ;;  %s62_s9 = ssub.s32 %s1181_s26, %s1514_s30 }
   0xc   : > { %p74_p2 = scmp.eq.s32.totalorder %s1189_s28, 0  ;;  %p33_p3 = scmp.ge.s32.totalorder %s1516_s7, 3 }
   0xd   : > { %p79_p4 = scmp.ne.s32.totalorder %s1165_s22, %s1161_s21  ;;  %p80_p6 = scmp.eq.s32.totalorder %s880_s29, 0 }
   0xe   : > { %p1287_p5 = por %p74_p2, %p73_p1  ;;  %s1518_s7 = smov (%p33_p3, %s1516_s7), 0 }
   0xf   : > { %p1293_p7 = por %p80_p6, %p79_p4  ;;  %s61_s12 = ssub.s32 %s1185_s27, %s1518_s7 }
  0x10   : > { %p1003_p8 = scmp.lt.s32.totalorder %s1189_s28, 6  ;;  %s63_s13 = sor.u32 %s62_s9, %s61_s12 }
  0x11   : > { %s237_s14 = sand.u32 1, %s1169_s23   ;;  %p64_p9 = scmp.eq.s32.totalorder %s63_s13, 0 }
  0x12   : > { %s884_s15 = sshll.u32 %s237_s14, 5  ;;  %s885_s16 = sshll.u32 %s1185_s27, 3 }
  0x13   : > { %s1303_s17 = scalar_select %p64_p9, %s1169_s23, %s66_s8  }
  0x14   : > { %s246_s18 = sadd.s32 %s1181_s26, %s885_s16  ;;  %s241_s20 = scalar_lea.vmem [#allocation6], %s884_s15 }
  0x15   : > { %s886_s19 = sshll.u32 %s246_s18, 7  ;;  %s249_s21 = sshll.u32 %s241_s20, 4  ;;  %s1311_s21 = int_to_ptr.vmem [resolvable:$true] %s249_s21 }
  0x16   : > { %s1309_s5 = scalar_lea.hbm %s1491_s1, %s886_s19  ;;  %p1317_p10 = pnand %p1003_p8, %p1287_p5 }
  0x17   : > { %s1322_s9 = scalar_lea.sflag [#allocation7], %s237_s14  ;;  %s1093_s30 = scalar_lea.hbm %s1309_s5, 512 }
  0x18   : > { %p1094_p12 = scmp.ne.s32.totalorder %s1309_s5, %s1093_s30  ;;  %p1095_p13 = pneg %p1317_p10 }
  0x19   : > { %s1098_s13 = scalar_lea.hbm %s1491_s1, 3072  ;;  %p1099_p2 = scmp.lt.u32.totalorder %s1309_s5, %s1491_s1 }
  0x1a   : > { %p1096_p0 = pnand %p1095_p13, %p1094_p12  ;;  %p1100_p3 = scmp.lt.u32.totalorder %s1098_s13, %s1093_s30 }
  0x1b   : > { %p1102_p5 = scmp.lt.u32.totalorder %s1093_s30, %s1309_s5 }
  0x1c   : > { %p1097_p1 = pneg %p1096_p0  ;;  %p1101_p4 = por %p1100_p3, %p1099_p2 }
  0x1e   : > { %p1103_p6 = por %p1102_p5, %p1101_p4 }
  0x20   : > { %p1104_p8 = pnand %p1103_p6, %p1097_p1 }
  0x22   : > { %1107 = shalt.err (!%p1104_p8)
}
  0x23   : > { %s1108_s14 = scalar_lea.vmem %s1311_s21, 512  ;;  %s1191_s18 = smov [#allocation6]  }
  0x24   : > { %p1109_p9 = scmp.ne.s32.totalorder %s1311_s21, %s1108_s14  ;;  %s1113_s19 = sshll.u32 %s1191_s18, 4  ;;  %s1114_s19 = int_to_ptr.vmem [resolvable:$false] %s1113_s19 }
  0x25   : > { %s1115_s20 = scalar_lea.vmem %s1114_s19, 1024  ;;  %p1116_p11 = scmp.lt.s32.totalorder %s1311_s21, %s1114_s19 }
  0x26   : > { %p1111_p12 = pnand %p1109_p9, %p1095_p13  ;;  %p1117_p2 = scmp.lt.s32.totalorder %s1115_s20, %s1108_s14 }
  0x28   : > { %p1112_p0 = pneg %p1111_p12  ;;  %p1118_p3 = por %p1117_p2, %p1116_p11 }
  0x2a   : > { %p1119_p4 = pnand %p1118_p3, %p1112_p0 }
  0x2c   : > { %1122 = shalt.err (!%p1119_p4)
}
  0x2d   : > { %s1192_s29 = smov 256   ;;  %s1193_s30 = smov 128  }
  0x2e   : > { %s1194_s12 = smov 8   ;;  %p267_p13 = scmp.lt.s32.totalorder %s1189_s28, 7 }
  0x2f   : > { %1002 = dma.hbm_to_vmem [thread:$0]  (!%p1317_p10), %s1309_s5, 512, %s1311_s21, %s1322_s9, %s1192_s29, %s1193_s30, %s1194_s12  }
  0x30   : > { %p1503_p1 = scmp.ge.s32.totalorder %s1189_s28, 1 }
  0x32   : > { %p268_p5 = pnand %p1503_p1, %p267_p13 }
  0x33   : > { %s273_s10 = sand.u32 (!%p268_p5), 1, %s1165_s22  }
  0x34   : > { %271 = sbr.rel (%p268_p5) target bundleno = 1210 (0x4ba), region = 44  ;;  %s888_s13 = sshll.u32 (!%p268_p5), %s273_s10, 5 }
  0x35   : > { %s274_s15 = scalar_lea.sflag (!%p268_p5), [#allocation7], %s273_s10  ;;  %s1354_s16 = scalar_lea.vmem (!%p268_p5), [#allocation6], %s888_s13 }
  0x3b   : > { %1156 = dma.done.wait (%p1293_p7), %s274_s15, 512  }
  0x3c   : > { %1158 = vsyncadd (%p1293_p7), %s274_s15, 4294966784  ;;  %p318_p10 = scmp.lt.s32.totalorder %s1177_s25, 2  ;;  %p325_p11 = scmp.lt.s32.totalorder %s1173_s24, 1 }
  0x3d   : > { %p894_p7 = scmp.ne.s32.totalorder %s1173_s24, 0 }
  0x3e   : > { %s1520_s25 = smov (!%p318_p10, %s1177_s25), 2  ;;  %vm347_vm0 = vcmask (!%p894_p7), 261120   ;;  %v339_v5 = vld [vmem:[%s1493_s3] sm:$0xff] (!%p894_p7)  ;;  %v341_v6 = vld [vmem:[%s1493_s3 + $0x10] sm:$0xff] (!%p894_p7)  ;;  %v340_v8 = vld [vmem:[%s1493_s3 + $0x8] sm:$0xff] (!%p894_p7)  ;;  %vm445_vm1 = vcmask (!%p894_p7), 7168  }
  0x3f   : > { %s326_s5 = scalar_select %p325_p11, %s1173_s24, 1 }
  0x40   : > { %s909_s21 = sshll.u32 %s1520_s25, 5  ;;  %s891_s8 = sshll.u32 %s1520_s25, 1  ;;  %940 = vmatprep.mubr.msk.f32.mxu0 (!%p894_p7), %vm347_vm0, %v339_v5  ;;  %943 = vmatprep.mubr.msk.f32.mxu1 (!%p894_p7), %vm347_vm0, %v341_v6  ;;  %v342_v9 = vld [vmem:[%s1493_s3 + $0x18] sm:$0xff] (!%p894_p7)  ;;  %vm450_vm2 = vcmask (!%p894_p7), 0   ;;  %v1195_v10 = vmov (!%p894_p7), -inf   ;;  %v1196_v11 = vmov (!%p894_p7), 0.0  }
  0x41   : > { %s322_s18 = scalar_lea.vmem %s1490_s0, %s909_s21  ;;  %s1367_s19 = sadd.s32 %s891_s8, %s326_s5  ;;  %451 = vst.msk [vmem:[#allocation3] sm:$0x1] (!%p894_p7), %vm450_vm2, %v1195_v10  ;;  %452 = vst.msk [vmem:[#allocation4] sm:$0x1] (!%p894_p7), %vm450_vm2, %v1196_v11 }
  0x42   : > { %s329_s29 = scalar_lea.vmem %s1492_s2, %s1367_s19  ;;  %s1376_s10 = scalar_lea.vmem %s1496_s6, %s909_s21  ;;  %v343_v0 = vld [vmem:[%s322_s18] sm:$0xff] (!%p894_p7)  ;;  %v344_v1 = vld [vmem:[%s322_s18 + $0x8] sm:$0xff] (!%p894_p7)  ;;  %v345_v2 = vld [vmem:[%s322_s18 + $0x10] sm:$0xff] (!%p894_p7)  ;;  %453 = vst.msk [vmem:[#allocation5] sm:$0xff] (!%p894_p7), %vm445_vm1, %v1196_v11 }
  0x43   : > { %338 = sbr.rel (%p894_p7) target bundleno = 291 (0x123), region = 52  ;;  %v971_v3 = vpack.c.bf16 (!%p894_p7), %v344_v1, %v343_v0  ;;  %v346_v4 = vld [vmem:[%s322_s18 + $0x18] sm:$0xff] (!%p894_p7)  ;;  %454 = vst.msk [vmem:[#allocation5 + $0x8] sm:$0xff] (!%p894_p7), %vm445_vm1, %v1196_v11  ;;  %455 = vst.msk [vmem:[#allocation5 + $0x10] sm:$0xff] (!%p894_p7), %vm445_vm1, %v1196_v11 }
  0x44   : > { %v975_v7 = vpack.c.bf16 (!%p894_p7), %v346_v4, %v345_v2  ;;  %456 = vst.msk [vmem:[#allocation5 + $0x18] sm:$0xff] (!%p894_p7), %vm445_vm1, %v1196_v11 }
  0x45   : > { %972 = vmatprep.subr.bf16.mxu0 (!%p894_p7), %v971_v3  ;;  %993 = vmatprep.subr.bf16.mxu1 (!%p894_p7), %v971_v3 }
  0x46   : > { %974 = vmatpush3.bf16.msra.mxu0 (!%p894_p7), %v971_v3  ;;  %995 = vmatpush3.bf16.msra.mxu1 (!%p894_p7), %v971_v3 }
  0x47   : > { %976 = vmatprep.subr.bf16.mxu0 (!%p894_p7), %v975_v7  ;;  %994 = vmatprep.subr.bf16.mxu1 (!%p894_p7), %v975_v7 }
  0x4a   : > { %978 = vmatpush3.bf16.msra.mxu0 %v975_v7  ;;  %996 = vmatpush3.bf16.msra.mxu1 %v975_v7 }
  0x4d   : > { %941 = vmatmul.mubr.msk.f32.vlgmr.msra.gmra.mrb[0].mxu0 %vm347_vm0, %v340_v8  ;;  %944 = vmatmul.mubr.msk.f32.vlgmr.msra.gmra.mrb[0].mxu1 %vm347_vm0, %v342_v9 }
 0x120   : > { %v942_v12 = vpop.f32.mrb[0].mxu0  ;;  %v945_v13 = vpop.f32.mrb[0].mxu1 }
 0x121   : > { %447 = vst.msk [vmem:[#allocation2 + $0x8] sm:$0xff] %vm445_vm1, %v942_v12  ;;  %449 = vst.msk [vmem:[#allocation2 + $0x18] sm:$0xff] %vm445_vm1, %v945_v13  ;;  %v426_v14 = vpop.f32.mrb[1].mxu0  ;;  %v436_v15 = vpop.f32.mrb[1].mxu1 }
 0x122   : > { %446 = vst.msk [vmem:[#allocation2] sm:$0xff] %vm445_vm1, %v426_v14  ;;  %448 = vst.msk [vmem:[#allocation2 + $0x10] sm:$0xff] %vm445_vm1, %v436_v15 }
 0x123 PF: > { %v1404_v16 = vld [vmem:[%s1354_s16] sm:$0xff]  ;;  %v1407_v17 = vld [vmem:[%s1354_s16 + $0x8] sm:$0xff]  ;;  %v1410_v18 = vld [vmem:[%s1354_s16 + $0x10] sm:$0xff]  ;;  %vm465_vm3 = vcmask 261120   ;;  %v1197_v22 = vmov 0   ;;  %v1198_v31 = vmov 0.0|0.0   ;;  %v687_v62 = vlaneseq }
 0x124   : > { %v979_v19 = vpack.c.bf16 %v1407_v17, %v1404_v16  ;;  %v1415_v20 = vld [vmem:[%s1354_s16 + $0x18] sm:$0xff]  ;;  %1077 = vset.pattern.permute.xlu0 %v1197_v22  ;;  %1078 = vset.pattern.permute.xlu1 %v1197_v22  ;;  %v462_v28 = vld [vmem:[%s1494_s4 + $0x8] sm:$0xff]  ;;  %v463_v29 = vld [vmem:[%s1494_s4 + $0x10] sm:$0xff]  ;;  %vm1199_vm4 = vmmov 0   ;;  %v1200_v32 = vmov 0.0   ;;  %s1504_s21 = sld [smem:[#allocation10_spill]] }
 0x125   : > { %v461_v21 = vld [vmem:[%s1494_s4] sm:$0xff]  ;;  %v983_v23 = vpack.c.bf16 %v1415_v20, %v1410_v18  ;;  %v464_v30 = vld [vmem:[%s1494_s4 + $0x18] sm:$0xff]  ;;  %987 = vmatprep.subr.bf16.mxu1 %v1198_v31  ;;  %968 = vmatprep.mubr.msk.f32.mxu1 %vm1199_vm4, %v1200_v32  ;;  %vm674_vm6 = vcmask 1040384   ;;  %vm707_vm7 = vcmask 0   ;;  %v688_v63 = vshrl.u32 %v687_v62, 7  ;;  %s904_s19 = sshll.u32 %s1173_s24, 7 }
 0x126   : > { %954 = vmatprep.mubr.msk.f32.mxu0 %vm465_vm3, %v461_v21  ;;  %980 = vmatprep.subr.bf16.mxu0 %v979_v19  ;;  %v669_v52 = vld [vmem:[%s329_s29] sm:$0x1]  ;;  %v696_v5 = vand.u32 127, %v687_v62  ;;  %v697_v6 = vstv %s904_s19  ;;  %v701_v22 = vld [vmem:[#allocation4] sm:$0x1]  ;;  %vm743_vm9 = vcmask 7168  }
 0x127   : > { %982 = vmatpush3.bf16.msra.mxu0 %v979_v19  ;;  %v670_v53 = vunpack.c.0.s8 %v669_v52  ;;  %v673_v58 = vld [vmem:[#allocation3] sm:$0x1]  ;;  %v689_v0 = vsub.s32 0, %v688_v63  ;;  %p905_p6 = scmp.ne.s32.totalorder %s1173_s24, 1 }
 0x128   : > { %v564_v26 = vld [vmem:[#allocation2 + $0x8] sm:$0xff]  ;;  %984 = vmatprep.subr.bf16.mxu0 %v983_v23  ;;  %v566_v27 = vld [vmem:[#allocation2 + $0x18] sm:$0xff]  ;;  %v698_v7 = vadd.s32 %v697_v6, %v696_v5 }
 0x129   : > { %v563_v24 = vld [vmem:[#allocation2] sm:$0xff]  ;;  %v565_v25 = vld [vmem:[#allocation2 + $0x10] sm:$0xff]  ;;  %vm671_vm5 = vcmp.ne.s32.totalorder %v670_v53, 0 }
 0x12a   : > { %569 = vperm.xlu0 %1077, %v563_v24   ;;  %579 = vperm.xlu1 %1078, %v565_v25   ;;  %v595_v51 = vld [vmem:[%s1504_s21] sm:$0x1]  ;;  %vm699_vm8 = vcmp.lt.s32.totalorder %v698_v7, 200  ;;  %v709_v25 = vld [vmem:[#allocation5] sm:$0xff] }
 0x12b   : > { %986 = vmatpush3.bf16.msra.mxu0 %v983_v23 }
 0x12e   : > { %574 = vperm.xlu0 %1077, %v564_v26   ;;  %584 = vperm.xlu1 %1078, %v566_v27   ;;  %v712_v27 = vld [vmem:[#allocation5 + $0x18] sm:$0xff] }
 0x12f   : > { %955 = vmatmul.mubr.msk.f32.vlgmr.msra.gmra.mrb[0].mxu0 %vm465_vm3, %v462_v28 }
 0x130   : > { %957 = vmatprep.mubr.msk.f32.mxu0 %vm465_vm3, %v463_v29  ;;  %v710_v29 = vld [vmem:[#allocation5 + $0x8] sm:$0xff] }
 0x133   : > { %958 = vmatmul.mubr.msk.f32.gmra.mrb[2].mxu0 %vm465_vm3, %v464_v30 }
 0x1a9   : > { %v570_v33 = vpop.permute.xlu0 %569  ;;  %v580_v34 = vpop.permute.xlu1 %579 }
 0x1ad   : > { %v575_v35 = vpop.permute.xlu0 %574  ;;  %v585_v40 = vpop.permute.xlu1 %584 }
 0x202   : > { %v956_v36 = vpop.f32.mrb[0].mxu0 }
 0x203   : > { %v588_v37 = vadd.f32 %v956_v36, %v575_v35  ;;  %v544_v38 = vpop.f32.mrb[1].mxu0 }
 0x204   : > { %v587_v39 = vadd.f32 %v570_v33, %v544_v38 }
 0x205   : > { %1079 = vtanh.f32 %v588_v37 }
 0x206   : > { %1081 = vtanh.f32 %v587_v39  ;;  %v959_v41 = vpop.f32.mrb[2].mxu0 }
 0x207   : > { %v590_v42 = vadd.f32 %v959_v41, %v585_v40  ;;  %v554_v43 = vpop.f32.mrb[3].mxu0 }
 0x208   : > { %v589_v44 = vadd.f32 %v580_v34, %v554_v43  ;;  %v711_v34 = vld [vmem:[#allocation5 + $0x10] sm:$0xff] }
 0x209   : > { %1083 = vtanh.f32 %v590_v42 }
 0x20a   : > { %1085 = vtanh.f32 %v589_v44 }
 0x20f   : > { %v1080_v45 = vpop.eup %1079 }
 0x210   : > { %v1082_v46 = vpop.eup %1081 }
 0x211   : > { %v988_v47 = vpack.c.bf16 %v1080_v45, %v1082_v46 }
 0x213   : > { %v1084_v48 = vpop.eup %1083  ;;  %989 = vmatpush3.bf16.msra.mxu1 %v988_v47 }
 0x214   : > { %v1086_v49 = vpop.eup %1085  ;;  %990 = vmatprep.subr.bf16.mxu1 %v1198_v31 }
 0x215   : > { %v991_v50 = vpack.c.bf16 %v1084_v48, %v1086_v49 }
 0x217   : > { %992 = vmatpush3.bf16.msra.mxu1 %v991_v50 }
 0x21a   : > { %969 = vmatmul.mubr.msk.f32.vlgmr.msra.gmra.mrb[0].mxu1 %vm465_vm3, %v595_v51 }
 0x2ed   : > { %v665_v54 = vpop.f32.mrb[0].mxu1 }
 0x2ee   : > { %v672_v55 = vsel %vm671_vm5, %v665_v54, -1e+09  ;;  %v970_v56 = vpop.f32.mrb[1].mxu1 }
 0x2ef   : > { %v675_v57 = vsel %vm674_vm6, %v672_v55, -inf }
 0x2f0   : > { %676 = vmax.xlane.f32.xlu0 %v675_v57 }
 0x37d   : > { %v677_v59 = vpop.xlane.xlu0 %676 }
 0x37e   : > { %v678_v60 = vmax.f32 %v673_v58, %v677_v59 }
 0x380   : > { %v679_v61 = vsub.f32 %v673_v58, %v678_v60  ;;  %748 = vst.msk [vmem:[#allocation3] sm:$0x1] %vm707_vm7, %v678_v60  ;;  %684 = vperm.xlu1 %1078, %v678_v60  }
 0x382   : > { %v680_v19 = vmul.f32 1.442695, %v679_v61 }
 0x3ff   : > { %v685_v1 = vpop.permute.xlu1 %684 }
 0x400   : > { %v690_v2 = vrot.slane %v685_v1, %v689_v0 }
 0x402   : > { %v691_v3 = vsub.f32 %v672_v55, %v690_v2 }
 0x404   : > { %v692_v4 = vmul.f32 1.442695, %v691_v3 }
 0x406   : > { %1087 = vpow2.f32 %v692_v4 }
 0x407   : > { %1089 = vpow2.f32 %v680_v19 }
 0x410   : > { %v1088_v8 = vpop.eup %1087 }
 0x411   : > { %v700_v9 = vsel %vm699_vm8, %v1088_v8, 0.0  ;;  %v1090_v21 = vpop.eup %1089 }
 0x412   : > { %v703_v10 = vsel %vm674_vm6, %v700_v9, 0.0  ;;  %v726_v11 = vrot.slane %v700_v9, %v689_v0  ;;  %v717_v23 = vrot.slane %v1090_v21, %v689_v0  ;;  %v702_v24 = vmul.f32 %v1090_v21, %v701_v22 }
 0x413   : > { %704 = vadd.xlane.f32.xlu1 %v703_v10 }
 0x414   : > { %v727_v12 = vmul.f32 %v726_v11, %v1404_v16  ;;  %v730_v13 = vmul.f32 %v726_v11, %v1415_v20  ;;  %v728_v14 = vmul.f32 %v726_v11, %v1407_v17  ;;  %v729_v15 = vmul.f32 %v726_v11, %v1410_v18 }
 0x415   : > { %v719_v28 = vmul.f32 %v717_v23, %v709_v25  ;;  %v722_v17 = vmul.f32 %v717_v23, %v712_v27  ;;  %v720_v32 = vmul.f32 %v717_v23, %v710_v29  ;;  %v721_v36 = vmul.f32 %v717_v23, %v711_v34 }
 0x416   : > { %731 = vadd.xlane.f32.xlu0 %v727_v12 }
 0x417   : > { %737 = vadd.xlane.f32.xlu1 %v730_v13 }
 0x41a   : > { %733 = vadd.xlane.f32.xlu0 %v728_v14 }
 0x41e   : > { %735 = vadd.xlane.f32.xlu0 %v729_v15 }
 0x4a0   : > { %v705_v26 = vpop.xlane.xlu1 %704 }
 0x4a1   : > { %v706_v16 = vadd.f32 %v705_v26, %v702_v24 }
 0x4a3   : > { %708 = vst.msk [vmem:[#allocation4] sm:$0x1] %vm707_vm7, %v706_v16  ;;  %v732_v20 = vpop.xlane.xlu0 %731 }
 0x4a4   : > { %v739_v30 = vadd.f32 %v732_v20, %v719_v28  ;;  %v738_v18 = vpop.xlane.xlu1 %737 }
 0x4a5   : > { %v742_v31 = vadd.f32 %v738_v18, %v722_v17 }
 0x4a6   : > { %744 = vst.msk [vmem:[#allocation5] sm:$0xff] %vm743_vm9, %v739_v30 }
 0x4a7   : > { %747 = vst.msk [vmem:[#allocation5 + $0x18] sm:$0xff] %vm743_vm9, %v742_v31  ;;  %v734_v33 = vpop.xlane.xlu0 %733 }
 0x4a8   : > { %v740_v35 = vadd.f32 %v734_v33, %v720_v32  ;;  %752 = sbr.rel (%p905_p6) target bundleno = 1210 (0x4ba), region = 56 }
 0x4aa   : > { %745 = vst.msk [vmem:[#allocation5 + $0x8] sm:$0xff] %vm743_vm9, %v740_v35  ;;  %v906_v39 = vld [vmem:[#allocation4] ss:$0 sm:$0xff] (!%p905_p6) }
 0x4ab   : > { %v736_v37 = vpop.xlane.xlu0 %735  ;;  %1091 = vrcp.f32 (!%p905_p6), %v906_v39 }
 0x4ac   : > { %v741_v38 = vadd.f32 %v736_v37, %v721_v36 }
 0x4ad   : > { %v753_v40 = vld [vmem:[#allocation5] sm:$0xff] (!%p905_p6) }
 0x4ae   : > { %746 = vst.msk [vmem:[#allocation5 + $0x10] sm:$0xff] %vm743_vm9, %v741_v38  ;;  %v756_v43 = vld [vmem:[#allocation5 + $0x18] sm:$0xff] (!%p905_p6) }
 0x4b1   : > { %v754_v41 = vld [vmem:[#allocation5 + $0x8] sm:$0xff] }
 0x4b5   : > { %v755_v42 = vld [vmem:[#allocation5 + $0x10] sm:$0xff]  ;;  %v1092_v44 = vpop.eup %1091 }
 0x4b6   : > { %v765_v45 = vmul.f32 %v1092_v44, %v753_v40  ;;  %v766_v46 = vmul.f32 %v1092_v44, %v754_v41  ;;  %v767_v47 = vmul.f32 %v1092_v44, %v755_v42  ;;  %v768_v48 = vmul.f32 %v1092_v44, %v756_v43 }
 0x4b8   : > { %769 = vst.msk [vmem:[%s1376_s10] sm:$0xff] %vm743_vm9, %v765_v45  ;;  %770 = vst.msk [vmem:[%s1376_s10 + $0x8] sm:$0xff] %vm743_vm9, %v766_v46 }
 0x4b9   : > { %771 = vst.msk [vmem:[%s1376_s10 + $0x10] sm:$0xff] %vm743_vm9, %v767_v47  ;;  %772 = vst.msk [vmem:[%s1376_s10 + $0x18] sm:$0xff] %vm743_vm9, %v768_v48 }
 0x4ba PF: > { %s19_s28 = sadd.s32 1, %s1189_s28   ;;  %s1505_s29 = sld [smem:[#allocation9_spill]] }
 0x4bb   : > { %p16_p8 = scmp.ge.s32.totalorder %s19_s28, 8   ;;  %s1506_s21 = smov %s1165_s22 }
 0x4bc   : > { %s1507_s22 = smov %s1169_s23  ;;  %s1508_s23 = smov %s1303_s17 }
 0x4bd   : > { %s1509_s24 = smov %s1181_s26  ;;  %s1510_s25 = smov %s1185_s27 }
 0x4be   : > { %s1512_s27 = smov %s1518_s7  ;;  %18 = sbr.rel (!%p16_p8) target bundleno = 7 (0x7), region = 98 }
 0x4c0   : > { %s1511_s26 = smov %s1505_s29 }
 0x4c5   :  { %794 = vsyncpa [#allocation7], 1 }
 0x4c6   :  { %796 = vsyncpa [#allocation7 + $0x1], 1 }

</bundles_post_ra>
